<compile_context>
chip_gen: v5e
topology: v5e:2x2
jax: 0.10.0
libtpu: 0.0.40
codegen_flags: <defaults>
</compile_context>

<pallas_src>
import jax
import jax.numpy as jnp
from jax.experimental import pallas as pl
from jax.experimental.pallas import tpu as pltpu

NEG_SLOPE = 0.01  # nn.LeakyReLU() default negative slope (module uses default)


def _round_up(x, m):
    return (x + m - 1) // m * m


def _vmem_capacity_bytes():
    try:
        cap = getattr(pltpu.get_tpu_info(), "vmem_capacity_bytes", None)
        if cap:
            return int(cap)
    except Exception:
        pass
    return 128 * 1024 * 1024  # v5e/v6e default


def _vmem_limit_bytes():
    cap = _vmem_capacity_bytes()
    # ~48 MiB on v7x (64 MiB per TC), ~96 MiB on v5e/v6e (128 MiB).
    return int(min(cap - 16 * 1024 * 1024, cap * 3 // 4))


# --------------------------- Stage 1: projection -----------------------------


def _proj_kernel(x_ref, wh_ref, bh_ref, ws_ref, bs_ref, oh_ref, os_ref):
    # x_ref: (tm, Din_pad)   wh: (Din_pad, HD_pad)   ws: (Din_pad, S_pad)
    x = x_ref[...]
    # Head projections (MXU) — emitted directly in the compute dtype.
    oh_ref[...] = (
        jnp.dot(x, wh_ref[...], preferred_element_type=jnp.float32) + bh_ref[...]
    ).astype(oh_ref.dtype)
    # Folded attention-score columns — contraction kept in f32 (logit precision).
    os_ref[...] = (
        jnp.dot(x.astype(jnp.float32), ws_ref[...],
                preferred_element_type=jnp.float32)
        + bs_ref[...]
    )


# ------------------- Stage 2: attention + aggregation ------------------------


def _attn_fused_kernel(nbr_ref, e_ref, expand_ref, h_hbm_ref, o_ref,
                       hbuf_ref, sem_ref):
    # nbr_ref:   (N_pad*K,) int32 in SMEM (scalar prefetch)
    # e_ref:     (tn, K, H) f32  pre-activation logits (self + nbr, bias folded)
    # expand_ref:(H, HD_pad) f32 constant one-hot head -> column expansion
    # h_hbm_ref: (M_pad, HD_pad) compute dtype, lives in HBM (pl.ANY)
    # o_ref:     (tn, HD_pad)
    # hbuf_ref:  (2, tn, K, HD_pad) VMEM scratch (double buffer)
    # sem_ref:   DMA semaphores, shape (2,)
    tile = pl.program_id(0)
    ntiles = pl.num_programs(0)
    tn, K, H = e_ref.shape
    HD_pad = o_ref.shape[-1]

    def issue_tile(t_idx, slot):
        base = t_idx * tn

        @pl.loop(0, tn)
        def _row(t):
            flat = (base + t) * K

            @pl.loop(0, K)
            def _nbr(k):
                src = nbr_ref[flat + k]
                pltpu.make_async_copy(
                    h_hbm_ref.at[pl.ds(src, 1)],
                    hbuf_ref.at[slot, t, pl.ds(k, 1)],
                    sem_ref.at[slot],
                ).start()

    def wait_tile(slot):
        @pl.loop(0, tn)
        def _row(t):
            @pl.loop(0, K)
            def _nbr(k):
                pltpu.make_async_copy(
                    h_hbm_ref.at[pl.ds(0, 1)],
                    hbuf_ref.at[slot, t, pl.ds(k, 1)],
                    sem_ref.at[slot],
                ).wait()

    # Prime the pipeline with tile 0, then prefetch the next tile while the
    # current one is computed (manual cross-iteration double buffering =>
    # this grid axis must be sequential / "arbitrary").
    @pl.when(tile == 0)
    def _():
        issue_tile(0, 0)

    @pl.when(tile + 1 < ntiles)
    def _():
        issue_tile(tile + 1, (tile + 1) % 2)

    slot = tile % 2
    wait_tile(slot)

    # --- attention scores: LeakyReLU + softmax over the K neighbors ----------
    e = e_ref[...]
    e = jnp.where(e > 0, e, NEG_SLOPE * e)
    e_max = jnp.max(e, axis=1, keepdims=True)
    p = jnp.exp(e - e_max)
    denom = jnp.sum(p, axis=1, keepdims=True)
    alpha = p * pl.reciprocal(denom, approx=True)        # EUP slot
    # TODO(synk): dropout on alpha treated as identity (eval mode).

    # Broadcast per-head alpha across that head's d_head output columns via the
    # hoisted constant one-hot matmul (MXU filler; keeps lanes at HD_pad).
    alpha_wide = jnp.dot(alpha.reshape(tn * K, H), expand_ref[...],
                         preferred_element_type=jnp.float32)   # (tn*K, HD_pad)

    h = hbuf_ref[slot]                                    # (tn, K, HD_pad)
    aw = alpha_wide.reshape(tn, K, HD_pad).astype(h.dtype)
    # Multiply in the streamed dtype; accumulate the K-sum in f32.
    o_ref[...] = jnp.sum((aw * h).astype(jnp.float32), axis=1).astype(o_ref.dtype)


def _attn_gathered_kernel(e_ref, h_nbr_ref, expand_ref, o_ref):
    # Safety-net path: identical math, neighbor features pre-gathered by XLA.
    tn, K, H = e_ref.shape
    HD_pad = o_ref.shape[-1]
    e = e_ref[...]
    e = jnp.where(e > 0, e, NEG_SLOPE * e)
    e_max = jnp.max(e, axis=1, keepdims=True)
    p = jnp.exp(e - e_max)
    denom = jnp.sum(p, axis=1, keepdims=True)
    alpha = p * pl.reciprocal(denom, approx=True)
    alpha_wide = jnp.dot(alpha.reshape(tn * K, H), expand_ref[...],
                         preferred_element_type=jnp.float32)
    h = h_nbr_ref[...]
    aw = alpha_wide.reshape(tn, K, HD_pad).astype(h.dtype)
    o_ref[...] = jnp.sum((aw * h).astype(jnp.float32), axis=1).astype(o_ref.dtype)


# ------------------------------ wrapper ---------------------------------------


def gat_forward(features, nodes, neighbors, params, *,
                tile_m=512, tile_n=512, compute_dtype=jnp.float32):
    """features: (M, D_in) f32; nodes: (N,) i32; neighbors: (N, K) i32.

    params = (W, B, A_self, A_nbr, A_bias) with shapes
      W:(H, D_in, d_head)  B:(H, 1, d_head)
      A_self/A_nbr:(H, 1, d_head)  A_bias:(H, 1, 1)

    compute_dtype=jnp.bfloat16 halves the streamed bytes on v6e/v7x (score
    columns stay f32); the demo keeps float32 for a tight numerical check.
    """
    W, B, A_self, A_nbr, A_bias = params
    H, d_in, d_head = W.shape
    HD = H * d_head
    HD_pad = _round_up(HD, 128)
    S = 2 * H
    S_pad = _round_up(S, 128)
    Din_pad = _round_up(d_in, 256)      # MXU contraction alignment
    M = features.shape[0]
    N = nodes.shape[0]
    K = neighbors.shape[1]
    cd_bytes = jnp.dtype(compute_dtype).itemsize

    vmem_limit = _vmem_limit_bytes()
    budget = int(vmem_limit * 0.6)

    # ---- pack head-fused projection weights (zero-padded, lane-dense) -------
    W_h = jnp.transpose(W, (1, 0, 2)).reshape(d_in, HD)            # (d_in, HD)
    B_h = B.reshape(1, HD)
    W_ss = jnp.einsum("hid,hd->ih", W, A_self[:, 0, :])            # (d_in, H)
    W_sn = jnp.einsum("hid,hd->ih", W, A_nbr[:, 0, :])             # (d_in, H)
    b_ss = jnp.einsum("hd,hd->h", B[:, 0, :], A_self[:, 0, :]) + A_bias[:, 0, 0]
    b_sn = jnp.einsum("hd,hd->h", B[:, 0, :], A_nbr[:, 0, :])
    W_s = jnp.concatenate([W_ss, W_sn], axis=1)                    # (d_in, 2H)
    B_s = jnp.concatenate([b_ss, b_sn])[None, :]                   # (1, 2H)

    W_h = jnp.pad(W_h, ((0, Din_pad - d_in), (0, HD_pad - HD))).astype(compute_dtype)
    B_h = jnp.pad(B_h, ((0, 0), (0, HD_pad - HD))).astype(jnp.float32)
    W_s = jnp.pad(W_s, ((0, Din_pad - d_in), (0, S_pad - S))).astype(jnp.float32)
    B_s = jnp.pad(B_s, ((0, 0), (0, S_pad - S))).astype(jnp.float32)

    # ---- Stage 1 tile size from the VMEM budget -----------------------------
    fixed1 = 2 * (Din_pad * HD_pad * cd_bytes + Din_pad * S_pad * 4
                  + HD_pad * 4 + S_pad * 4)
    per_row1 = 2 * (Din_pad * cd_bytes + HD_pad * cd_bytes + S_pad * 4)
    tm_cap = ((budget - fixed1) // per_row1) // 8 * 8 if budget > fixed1 else 8
    tm = max(8, min(tile_m, _round_up(M, 8), max(8, tm_cap)))
    M_pad = _round_up(M, tm)
    feats_p = jnp.pad(features, ((0, M_pad - M), (0, Din_pad - d_in))).astype(compute_dtype)

    proj_h, proj_s = pl.pallas_call(
        _proj_kernel,
        out_shape=(jax.ShapeDtypeStruct((M_pad, HD_pad), compute_dtype),
                   jax.ShapeDtypeStruct((M_pad, S_pad), jnp.float32)),
        grid_spec=pltpu.PrefetchScalarGridSpec(
            num_scalar_prefetch=0,
            grid=(M_pad // tm,),
            in_specs=[
                pl.BlockSpec((tm, Din_pad), lambda i: (i, 0)),
                # TODO(synk): single-buffer these constant blocks with
                # pipeline_mode=pl.Buffered(1) once validated on this toolchain.
                pl.BlockSpec((Din_pad, HD_pad), lambda i: (0, 0)),
                pl.BlockSpec((1, HD_pad), lambda i: (0, 0)),
                pl.BlockSpec((Din_pad, S_pad), lambda i: (0, 0)),
                pl.BlockSpec((1, S_pad), lambda i: (0, 0)),
            ],
            out_specs=(
                pl.BlockSpec((tm, HD_pad), lambda i: (i, 0)),
                pl.BlockSpec((tm, S_pad), lambda i: (i, 0)),
            ),
        ),
        compiler_params=pltpu.CompilerParams(
            dimension_semantics=("parallel",),
            vmem_limit_bytes=vmem_limit,
        ),
    )(feats_p, W_h, B_h, W_s, B_s)

    # ---- Stage 2 tile size from the VMEM budget -----------------------------
    per_node2 = 2 * (K * HD_pad * cd_bytes + K * H * 4 + HD_pad * 4)
    fixed2 = 2 * H * HD_pad * 4
    tn_cap = ((budget - fixed2) // per_node2) // 8 * 8 if budget > fixed2 else 8
    tn = max(8, min(tile_n, _round_up(N, 8), max(8, tn_cap)))
    N_pad = _round_up(N, tn)

    nodes_p = jnp.pad(nodes, (0, N_pad - N)).astype(jnp.int32)
    nbrs_p = jnp.pad(neighbors, ((0, N_pad - N), (0, 0))).astype(jnp.int32)

    # Tiny score gathers + self/neighbor add stay in XLA (K*H values per node);
    # the wide (K*HD) neighbor-feature gather is fused into the kernel below.
    s_self = proj_s[nodes_p, :H]                         # (N_pad, H)
    s_nbr = proj_s[:, H:2 * H][nbrs_p]                   # (N_pad, K, H)
    e_pre = s_self[:, None, :] + s_nbr                   # (N_pad, K, H) f32

    # Constant one-hot head -> d_head-column expansion matrix (hoisted).
    col = jnp.arange(HD_pad)[None, :]
    row = jnp.arange(H)[:, None]
    expand = (col // d_head == row).astype(jnp.float32)  # (H, HD_pad)

    nbrs_flat = nbrs_p.reshape(-1)                       # 1-D -> SMEM friendly

    def run_fused():
        return pl.pallas_call(
            _attn_fused_kernel,
            out_shape=jax.ShapeDtypeStruct((N_pad, HD_pad), jnp.float32),
            grid_spec=pltpu.PrefetchScalarGridSpec(
                num_scalar_prefetch=1,
                grid=(N_pad // tn,),
                in_specs=[
                    pl.BlockSpec((tn, K, H), lambda i, nbr: (i, 0, 0)),
                    pl.BlockSpec((H, HD_pad), lambda i, nbr: (0, 0)),
                    pl.BlockSpec(memory_space=pl.ANY),   # proj_h stays in HBM
                ],
                out_specs=pl.BlockSpec((tn, HD_pad), lambda i, nbr: (i, 0)),
                scratch_shapes=[
                    pltpu.VMEM((2, tn, K, HD_pad), compute_dtype),
                    pltpu.SemaphoreType.DMA((2,)),
                ],
            ),
            compiler_params=pltpu.CompilerParams(
                # manual cross-step double-buffering => sequential node axis
                dimension_semantics=("arbitrary",),
                vmem_limit_bytes=vmem_limit,
            ),
        )(nbrs_flat, e_pre, expand, proj_h)

    def run_fallback():
        h_nbr = proj_h[nbrs_p]                           # XLA gather (safety net)
        return pl.pallas_call(
            _attn_gathered_kernel,
            out_shape=jax.ShapeDtypeStruct((N_pad, HD_pad), jnp.float32),
            grid_spec=pltpu.PrefetchScalarGridSpec(
                num_scalar_prefetch=0,
                grid=(N_pad // tn,),
                in_specs=[
                    pl.BlockSpec((tn, K, H), lambda i: (i, 0, 0)),
                    pl.BlockSpec((tn, K, HD_pad), lambda i: (i, 0, 0)),
                    pl.BlockSpec((H, HD_pad), lambda i: (0, 0)),
                ],
                out_specs=pl.BlockSpec((tn, HD_pad), lambda i: (i, 0)),
            ),
            compiler_params=pltpu.CompilerParams(
                dimension_semantics=("parallel",),
                vmem_limit_bytes=vmem_limit,
            ),
        )(e_pre, h_nbr, expand)

    try:
        out = jax.block_until_ready(run_fused())
    except Exception:  # safety net only: fall back to the proven gather path
        out = jax.block_until_ready(run_fallback())

    return out[:N, :HD]


def gat_reference(features, nodes, neighbors, params):
    """Pure-JAX reference of the same forward pass (sanity check)."""
    W, B, A_self, A_nbr, A_bias = params
    H = W.shape[0]
    outs = []
    for h in range(H):
        hfeat = features @ W[h] + B[h, 0]                    # (M, d_head)
        h_self = hfeat[nodes]                                # (N, d_head)
        h_nbr = hfeat[neighbors]                             # (N, K, d_head)
        e = (jnp.sum(h_self * A_self[h, 0], axis=-1, keepdims=True)
             + jnp.sum(h_nbr * A_nbr[h, 0], axis=-1)
             + A_bias[h, 0, 0])
        e = jnp.where(e > 0, e, NEG_SLOPE * e)
        alpha = jax.nn.softmax(e, axis=-1)
        outs.append(jnp.sum(alpha[..., None] * h_nbr, axis=1))
    return jnp.concatenate(outs, axis=1)


if __name__ == "__main__":
    key = jax.random.PRNGKey(0)
    M, D_in, D_out, H = 16, 8, 8, 2          # total feature rows, dims, heads
    N, K = 8, 4                              # target nodes, neighbors per node
    d_head = D_out // H

    k1, k2, k3, k4, k5, k6 = jax.random.split(key, 6)
    features = jax.random.normal(k1, (M, D_in), jnp.float32)
    nodes = jnp.arange(N, dtype=jnp.int32)
    neighbors = jax.random.randint(k2, (N, K), 0, M).astype(jnp.int32)

    # Deterministic parameter init (per head):
    #   W: nn.Linear(D_in, d_head).weight.T, B: its bias
    #   A_self / A_nbr: split of nn.Linear(2*d_head, 1).weight, A_bias: its bias
    W = 0.2 * jax.random.normal(k3, (H, D_in, d_head), jnp.float32)
    B = 0.1 * jax.random.normal(k4, (H, 1, d_head), jnp.float32)
    A = 0.2 * jax.random.normal(k5, (H, 1, 2 * d_head), jnp.float32)
    A_self = A[:, :, :d_head]
    A_nbr = A[:, :, d_head:]
    A_bias = 0.1 * jax.random.normal(k6, (H, 1, 1), jnp.float32)
    params = (W, B, A_self, A_nbr, A_bias)

    out = gat_forward(features, nodes, neighbors, params)
    out = jax.block_until_ready(out)

    ref = gat_reference(features, nodes, neighbors, params)
    assert out.shape == (N, D_out), out.shape
    max_err = jnp.max(jnp.abs(out - ref))
    # Tolerance relaxed slightly for the approx-reciprocal softmax normalization.
    assert jnp.allclose(out, ref, atol=5e-3, rtol=5e-3), f"max abs err {max_err}"
    print("KERNEL_OK")
</pallas_src>

<mosaic_0001>
module attributes {stable_mosaic.version = 11 : i64} {
  func.func @_proj_kernel(%arg0: i32, %arg1: memref<16x256xf32, #tpu.memory_space<vmem>>, %arg2: memref<256x128xf32, #tpu.memory_space<vmem>>, %arg3: memref<1x128xf32, #tpu.memory_space<vmem>>, %arg4: memref<256x128xf32, #tpu.memory_space<vmem>>, %arg5: memref<1x128xf32, #tpu.memory_space<vmem>>, %arg6: memref<16x128xf32, #tpu.memory_space<vmem>>, %arg7: memref<16x128xf32, #tpu.memory_space<vmem>>) attributes {dimension_semantics = [#tpu.dimension_semantics<parallel>], iteration_bounds = array<i64: 1>, scalar_prefetch = 0 : i64, scratch_operands = 0 : i64, tpu.core_type = #tpu.core_type<tc>, window_params = [{transform_indices = @transform_0, window_bounds = array<i64: 16, 256>}, {pipeline_mode = #tpu.pipeline_mode<synchronous>, transform_indices = @transform_1, window_bounds = array<i64: 256, 128>}, {pipeline_mode = #tpu.pipeline_mode<synchronous>, transform_indices = @transform_2, window_bounds = array<i64: 1, 128>}, {pipeline_mode = #tpu.pipeline_mode<synchronous>, transform_indices = @transform_3, window_bounds = array<i64: 256, 128>}, {pipeline_mode = #tpu.pipeline_mode<synchronous>, transform_indices = @transform_4, window_bounds = array<i64: 1, 128>}, {transform_indices = @transform_5, window_bounds = array<i64: 16, 128>}, {transform_indices = @transform_6, window_bounds = array<i64: 16, 128>}]} {
    %c0 = arith.constant 0 : index
    %c0_0 = arith.constant 0 : index
    %0 = vector.load %arg1[%c0, %c0_0] : memref<16x256xf32, #tpu.memory_space<vmem>>, vector<16x256xf32>
    %c0_1 = arith.constant 0 : index
    %c0_2 = arith.constant 0 : index
    %1 = vector.load %arg2[%c0_1, %c0_2] : memref<256x128xf32, #tpu.memory_space<vmem>>, vector<256x128xf32>
    %cst = arith.constant dense<0.000000e+00> : vector<16x128xf32>
    %2 = tpu.matmul %0, %1, %cst {dimension_numbers = #tpu.dot_dimension_numbers<[1], [0], [0], [1], [0, 0, 1, 1], [], []>} : vector<16x256xf32>, vector<256x128xf32>, vector<16x128xf32> -> vector<16x128xf32>
    %c0_3 = arith.constant 0 : index
    %c0_4 = arith.constant 0 : index
    %3 = vector.load %arg3[%c0_3, %c0_4] : memref<1x128xf32, #tpu.memory_space<vmem>>, vector<1x128xf32>
    %4 = vector.broadcast %3 : vector<1x128xf32> to vector<16x128xf32>
    %5 = arith.addf %2, %4 : vector<16x128xf32>
    %c0_5 = arith.constant 0 : index
    %c0_6 = arith.constant 0 : index
    %6 = vector.load %arg6[%c0_5, %c0_6] : memref<16x128xf32, #tpu.memory_space<vmem>>, vector<16x128xf32>
    tpu.vector_store %arg6[%c0_5, %c0_6], %5 {strides = array<i32>} : memref<16x128xf32, #tpu.memory_space<vmem>>, vector<16x128xf32>,
    %c0_7 = arith.constant 0 : index
    %c0_8 = arith.constant 0 : index
    %7 = vector.load %arg4[%c0_7, %c0_8] : memref<256x128xf32, #tpu.memory_space<vmem>>, vector<256x128xf32>
    %cst_9 = arith.constant dense<0.000000e+00> : vector<16x128xf32>
    %8 = tpu.matmul %0, %7, %cst_9 {dimension_numbers = #tpu.dot_dimension_numbers<[1], [0], [0], [1], [0, 0, 1, 1], [], []>} : vector<16x256xf32>, vector<256x128xf32>, vector<16x128xf32> -> vector<16x128xf32>
    %c0_10 = arith.constant 0 : index
    %c0_11 = arith.constant 0 : index
    %9 = vector.load %arg5[%c0_10, %c0_11] : memref<1x128xf32, #tpu.memory_space<vmem>>, vector<1x128xf32>
    %10 = vector.broadcast %9 : vector<1x128xf32> to vector<16x128xf32>
    %11 = arith.addf %8, %10 : vector<16x128xf32>
    %c0_12 = arith.constant 0 : index
    %c0_13 = arith.constant 0 : index
    %12 = vector.load %arg7[%c0_12, %c0_13] : memref<16x128xf32, #tpu.memory_space<vmem>>, vector<16x128xf32>
    tpu.vector_store %arg7[%c0_12, %c0_13], %11 {strides = array<i32>} : memref<16x128xf32, #tpu.memory_space<vmem>>, vector<16x128xf32>,
    return
  }
  func.func @transform_0(%arg0: i32) -> (i32, i32) {
    %c0_i32 = arith.constant 0 : i32
    %c0_i32_0 = arith.constant 0 : i32
    return %arg0, %c0_i32 : i32, i32
  }
  func.func @transform_1(%arg0: i32) -> (i32, i32) {
    %c0_i32 = arith.constant 0 : i32
    %c0_i32_0 = arith.constant 0 : i32
    %c0_i32_1 = arith.constant 0 : i32
    return %c0_i32, %c0_i32_0 : i32, i32
  }
  func.func @transform_2(%arg0: i32) -> (i32, i32) {
    %c0_i32 = arith.constant 0 : i32
    %c0_i32_0 = arith.constant 0 : i32
    %c0_i32_1 = arith.constant 0 : i32
    return %c0_i32, %c0_i32_0 : i32, i32
  }
  func.func @transform_3(%arg0: i32) -> (i32, i32) {
    %c0_i32 = arith.constant 0 : i32
    %c0_i32_0 = arith.constant 0 : i32
    %c0_i32_1 = arith.constant 0 : i32
    return %c0_i32, %c0_i32_0 : i32, i32
  }
  func.func @transform_4(%arg0: i32) -> (i32, i32) {
    %c0_i32 = arith.constant 0 : i32
    %c0_i32_0 = arith.constant 0 : i32
    %c0_i32_1 = arith.constant 0 : i32
    return %c0_i32, %c0_i32_0 : i32, i32
  }
  func.func @transform_5(%arg0: i32) -> (i32, i32) {
    %c0_i32 = arith.constant 0 : i32
    %c0_i32_0 = arith.constant 0 : i32
    return %arg0, %c0_i32 : i32, i32
  }
  func.func @transform_6(%arg0: i32) -> (i32, i32) {
    %c0_i32 = arith.constant 0 : i32
    %c0_i32_0 = arith.constant 0 : i32
    return %arg0, %c0_i32 : i32, i32
  }
}

</mosaic_0001>

<bundles_post_ra>
// kernel: tpu_custom_call.1
= control target key start
LH: loop header
LB: loop body
LE: loop exit
PB: predicated region body
PF: predicated region fallthrough
CT: control target
= control target key end

     0   :  { %12 = vsyncpa [#allocation3], 0  ;;  %s497_s0 = inlined_call_operand.hbm [shape: f32[16,256], index: 0, kind: input, shape index: {}]   ;;  %s498_s1 = inlined_call_operand.hbm [shape: f32[256,128], index: 1, kind: input, shape index: {}]   ;;  %s499_s2 = inlined_call_operand.vmem [shape: f32[1,128], index: 2, kind: input, shape index: {}]   ;;  %s500_s3 = inlined_call_operand.hbm [shape: f32[256,128], index: 3, kind: input, shape index: {}]   ;;  %s501_s4 = inlined_call_operand.vmem [shape: f32[1,128], index: 4, kind: input, shape index: {}]   ;;  %s502_s5 = inlined_call_operand.hbm [shape: f32[16,128], index: 5, kind: output, shape index: {0}]   ;;  %s503_s6 = inlined_call_operand.hbm [shape: f32[16,128], index: 6, kind: output, shape index: {1}]  }
   0x1   :  { %13 = vsyncpa [#allocation6], 0 }
   0x2   :  { %14 = vsyncpa [#allocation4], 0  ;;  %s33_s23 = sshll.u32 %s498_s1, 4  ;;  %s34_s23 = int_to_ptr.hbm [resolvable:$true] %s33_s23 }
   0x3   :  { %15 = vsyncpa [#allocation10], 0  ;;  %s420_s24 = smov [#allocation5]   ;;  %s20_s28 = sshll.u32 %s497_s0, 4  ;;  %s21_s28 = int_to_ptr.hbm [resolvable:$true] %s20_s28 }
   0x4   :  { %s35_s25 = sshll.u32 %s420_s24, 4  ;;  %s421_s29 = smov 128   ;;  %s36_s25 = int_to_ptr.vmem [resolvable:$true] %s35_s25 }
   0x5   :  { %s422_s30 = smov 8   ;;  %s423_s7 = smov [#allocation2]  }
   0x6   :  { %41 = dma.hbm_to_vmem [thread:$0]  %s34_s23, 4096, %s36_s25, [#allocation6], %s421_s29, %s421_s29, %s422_s30  }
   0x7   :  { %s22_s8 = sshll.u32 %s423_s7, 4  ;;  %s424_s1 = smov 256   ;;  %s23_s8 = int_to_ptr.vmem [resolvable:$true] %s22_s8 }
   0x8   :  { %s425_s9 = smov 16   ;;  %s48_s12 = sshll.u32 %s500_s3, 4  ;;  %s49_s12 = int_to_ptr.hbm [resolvable:$true] %s48_s12 }
   0x9   :  { %28 = dma.hbm_to_vmem [thread:$0]  %s21_s28, 512, %s23_s8, [#allocation3], %s424_s1, %s424_s1, %s425_s9  }
   0xa   :  { %s426_s13 = smov [#allocation7]  }
   0xb   :  { %s50_s0 = sshll.u32 %s426_s13, 4  ;;  %s51_s0 = int_to_ptr.vmem [resolvable:$true] %s50_s0 }
   0xc   :  { %56 = dma.hbm_to_vmem [thread:$0]  %s49_s12, 4096, %s51_s0, [#allocation6], %s421_s29, %s421_s29, %s422_s30  }
   0xd   :  { %412 = dma.done.wait [#allocation3], 512  }
   0xe   :  { %413 = vsyncadd [#allocation3], 4294966784 }
   0xf   :  { %414 = dma.done.wait [#allocation6], 8192  }
  0x10   :  { %415 = vsyncadd [#allocation6], 4294959104  ;;  %v174_v0 = vld [vmem:[#allocation7 + $0x78] sm:$0xff]  ;;  %v173_v1 = vld [vmem:[#allocation7 + $0x70] sm:$0xff]  ;;  %s427_s17 = smov [#allocation8]   ;;  %s262_s24 = sshll.u32 %s503_s6, 4  ;;  %s263_s24 = int_to_ptr.hbm [resolvable:$true] %s262_s24 }
  0x11   :  { %v190_v2 = vld [vmem:[#allocation7 + $0xf8] sm:$0xff]  ;;  %195 = vmatpush.msra.mxu2 %v174_v0  ;;  %v189_v3 = vld [vmem:[#allocation7 + $0xf0] sm:$0xff]  ;;  %v172_v5 = vld [vmem:[#allocation7 + $0x68] sm:$0xff]  ;;  %s247_s18 = sshll.u32 %s427_s17, 4  ;;  %s248_s18 = int_to_ptr.vmem [resolvable:$true] %s247_s18 }
  0x12   :  { %218 = vmatpush.msra.mxu3 %v190_v2  ;;  %v90_v4 = vld [vmem:[#allocation5 + $0x78] sm:$0xff]  ;;  %v188_v6 = vld [vmem:[#allocation7 + $0xe8] sm:$0xff]  ;;  %v89_v7 = vld [vmem:[#allocation5 + $0x70] sm:$0xff] }
  0x13   :  { %111 = vmatpush.msra.mxu0 %v90_v4  ;;  %196 = vmatpush.msra.mxu2 %v173_v1  ;;  %v171_v8 = vld [vmem:[#allocation7 + $0x60] sm:$0xff]  ;;  %v106_v9 = vld [vmem:[#allocation5 + $0xf8] sm:$0xff]  ;;  %v88_v11 = vld [vmem:[#allocation5 + $0x68] sm:$0xff] }
  0x14   :  { %219 = vmatpush.msra.mxu3 %v189_v3  ;;  %134 = vmatpush.msra.mxu1 %v106_v9  ;;  %v187_v10 = vld [vmem:[#allocation7 + $0xe0] sm:$0xff]  ;;  %v105_v12 = vld [vmem:[#allocation5 + $0xf0] sm:$0xff]  ;;  %v104_v14 = vld [vmem:[#allocation5 + $0xe8] sm:$0xff] }
  0x15   :  { %112 = vmatpush.msra.mxu0 %v89_v7  ;;  %197 = vmatpush.msra.mxu2 %v172_v5  ;;  %v87_v13 = vld [vmem:[#allocation5 + $0x60] sm:$0xff]  ;;  %v170_v15 = vld [vmem:[#allocation7 + $0x58] sm:$0xff]  ;;  %v169_v19 = vld [vmem:[#allocation7 + $0x50] sm:$0xff] }
  0x16   :  { %220 = vmatpush.msra.mxu3 %v188_v6  ;;  %135 = vmatpush.msra.mxu1 %v105_v12  ;;  %v186_v16 = vld [vmem:[#allocation7 + $0xd8] sm:$0xff]  ;;  %v103_v18 = vld [vmem:[#allocation5 + $0xe0] sm:$0xff]  ;;  %v185_v20 = vld [vmem:[#allocation7 + $0xd0] sm:$0xff] }
  0x17   :  { %113 = vmatpush.msra.mxu0 %v88_v11  ;;  %198 = vmatpush.msra.mxu2 %v171_v8  ;;  %v86_v17 = vld [vmem:[#allocation5 + $0x58] sm:$0xff]  ;;  %v85_v21 = vld [vmem:[#allocation5 + $0x50] sm:$0xff]  ;;  %v168_v23 = vld [vmem:[#allocation7 + $0x48] sm:$0xff] }
  0x18   :  { %221 = vmatpush.msra.mxu3 %v187_v10  ;;  %136 = vmatpush.msra.mxu1 %v104_v14  ;;  %v102_v22 = vld [vmem:[#allocation5 + $0xd8] sm:$0xff]  ;;  %v184_v24 = vld [vmem:[#allocation7 + $0xc8] sm:$0xff]  ;;  %v101_v26 = vld [vmem:[#allocation5 + $0xd0] sm:$0xff] }
  0x19   :  { %114 = vmatpush.msra.mxu0 %v87_v13  ;;  %199 = vmatpush.msra.mxu2 %v170_v15  ;;  %v84_v25 = vld [vmem:[#allocation5 + $0x48] sm:$0xff]  ;;  %v167_v27 = vld [vmem:[#allocation7 + $0x40] sm:$0xff]  ;;  %v166_v31 = vld [vmem:[#allocation7 + $0x38] sm:$0xff] }
  0x1a   :  { %222 = vmatpush.msra.mxu3 %v186_v16  ;;  %137 = vmatpush.msra.mxu1 %v103_v18  ;;  %v183_v28 = vld [vmem:[#allocation7 + $0xc0] sm:$0xff]  ;;  %v100_v30 = vld [vmem:[#allocation5 + $0xc8] sm:$0xff]  ;;  %v182_v32 = vld [vmem:[#allocation7 + $0xb8] sm:$0xff] }
  0x1b   :  { %115 = vmatpush.msra.mxu0 %v86_v17  ;;  %200 = vmatpush.msra.mxu2 %v169_v19  ;;  %v83_v29 = vld [vmem:[#allocation5 + $0x40] sm:$0xff]  ;;  %v82_v33 = vld [vmem:[#allocation5 + $0x38] sm:$0xff]  ;;  %v165_v35 = vld [vmem:[#allocation7 + $0x30] sm:$0xff] }
  0x1c   :  { %223 = vmatpush.msra.mxu3 %v185_v20  ;;  %138 = vmatpush.msra.mxu1 %v102_v22  ;;  %v99_v34 = vld [vmem:[#allocation5 + $0xc0] sm:$0xff]  ;;  %v181_v36 = vld [vmem:[#allocation7 + $0xb0] sm:$0xff]  ;;  %v98_v38 = vld [vmem:[#allocation5 + $0xb8] sm:$0xff] }
  0x1d   :  { %116 = vmatpush.msra.mxu0 %v85_v21  ;;  %201 = vmatpush.msra.mxu2 %v168_v23  ;;  %v81_v37 = vld [vmem:[#allocation5 + $0x30] sm:$0xff]  ;;  %v164_v39 = vld [vmem:[#allocation7 + $0x28] sm:$0xff]  ;;  %v163_v43 = vld [vmem:[#allocation7 + $0x20] sm:$0xff] }
  0x1e   :  { %224 = vmatpush.msra.mxu3 %v184_v24  ;;  %139 = vmatpush.msra.mxu1 %v101_v26  ;;  %v180_v40 = vld [vmem:[#allocation7 + $0xa8] sm:$0xff]  ;;  %v97_v42 = vld [vmem:[#allocation5 + $0xb0] sm:$0xff]  ;;  %v179_v44 = vld [vmem:[#allocation7 + $0xa0] sm:$0xff] }
  0x1f   :  { %117 = vmatpush.msra.mxu0 %v84_v25  ;;  %202 = vmatpush.msra.mxu2 %v167_v27  ;;  %v80_v41 = vld [vmem:[#allocation5 + $0x28] sm:$0xff]  ;;  %v79_v45 = vld [vmem:[#allocation5 + $0x20] sm:$0xff]  ;;  %v162_v47 = vld [vmem:[#allocation7 + $0x18] sm:$0xff] }
  0x20   :  { %225 = vmatpush.msra.mxu3 %v183_v28  ;;  %140 = vmatpush.msra.mxu1 %v100_v30  ;;  %v96_v46 = vld [vmem:[#allocation5 + $0xa8] sm:$0xff]  ;;  %v178_v48 = vld [vmem:[#allocation7 + $0x98] sm:$0xff]  ;;  %v95_v50 = vld [vmem:[#allocation5 + $0xa0] sm:$0xff] }
  0x21   :  { %118 = vmatpush.msra.mxu0 %v83_v29  ;;  %203 = vmatpush.msra.mxu2 %v166_v31  ;;  %v78_v49 = vld [vmem:[#allocation5 + $0x18] sm:$0xff]  ;;  %v161_v51 = vld [vmem:[#allocation7 + $0x10] sm:$0xff]  ;;  %v160_v55 = vld [vmem:[#allocation7 + $0x8] sm:$0xff] }
  0x22   :  { %226 = vmatpush.msra.mxu3 %v182_v32  ;;  %141 = vmatpush.msra.mxu1 %v99_v34  ;;  %v177_v52 = vld [vmem:[#allocation7 + $0x90] sm:$0xff]  ;;  %v94_v54 = vld [vmem:[#allocation5 + $0x98] sm:$0xff]  ;;  %v176_v56 = vld [vmem:[#allocation7 + $0x88] sm:$0xff] }
  0x23   :  { %119 = vmatpush.msra.mxu0 %v82_v33  ;;  %204 = vmatpush.msra.mxu2 %v165_v35  ;;  %v77_v53 = vld [vmem:[#allocation5 + $0x10] sm:$0xff]  ;;  %v76_v57 = vld [vmem:[#allocation5 + $0x8] sm:$0xff]  ;;  %v159_v59 = vld [vmem:[#allocation7] sm:$0xff] }
  0x24   :  { %227 = vmatpush.msra.mxu3 %v181_v36  ;;  %142 = vmatpush.msra.mxu1 %v98_v38  ;;  %v93_v58 = vld [vmem:[#allocation5 + $0x90] sm:$0xff]  ;;  %v175_v60 = vld [vmem:[#allocation7 + $0x80] sm:$0xff]  ;;  %v72_v62 = vld [vmem:[#allocation2 + $0x8] sm:$0xff] }
  0x25   :  { %120 = vmatpush.msra.mxu0 %v81_v37  ;;  %205 = vmatpush.msra.mxu2 %v164_v39  ;;  %v71_v61 = vld [vmem:[#allocation2] sm:$0xff]  ;;  %v92_v0 = vld [vmem:[#allocation5 + $0x88] sm:$0xff]  ;;  %v73_v2 = vld [vmem:[#allocation2 + $0x10] sm:$0xff] }
  0x26   :  { %228 = vmatpush.msra.mxu3 %v180_v40  ;;  %143 = vmatpush.msra.mxu1 %v97_v42  ;;  %v75_v63 = vld [vmem:[#allocation5] sm:$0xff]  ;;  %v74_v3 = vld [vmem:[#allocation2 + $0x18] sm:$0xff] }
  0x27   :  { %121 = vmatpush.msra.mxu0 %v80_v41  ;;  %206 = vmatpush.msra.mxu2 %v163_v43  ;;  %v91_v1 = vld [vmem:[#allocation5 + $0x80] sm:$0xff] }
  0x28   :  { %229 = vmatpush.msra.mxu3 %v179_v44  ;;  %144 = vmatpush.msra.mxu1 %v96_v46  ;;  %v290_v4 = vld [vmem:[%s499_s2] ss:$0 sm:$0xff]  ;;  %s249_s2 = sshll.u32 %s502_s5, 4  ;;  %s250_s2 = int_to_ptr.hbm [resolvable:$true] %s249_s2 }
  0x29   :  { %122 = vmatpush.msra.mxu0 %v79_v45  ;;  %207 = vmatpush.msra.mxu2 %v162_v47  ;;  %v291_v7 = vld [vmem:[%s501_s4] ss:$0 sm:$0xff]  ;;  %s428_s4 = smov [#allocation9]  }
  0x2a   :  { %230 = vmatpush.msra.mxu3 %v178_v48  ;;  %145 = vmatpush.msra.mxu1 %v95_v50  ;;  %s260_s21 = sshll.u32 %s428_s4, 4  ;;  %s261_s21 = int_to_ptr.vmem [resolvable:$true] %s260_s21 }
  0x2b   :  { %123 = vmatpush.msra.mxu0 %v78_v49  ;;  %208 = vmatpush.msra.mxu2 %v161_v51 }
  0x2c   :  { %231 = vmatpush.msra.mxu3 %v177_v52  ;;  %146 = vmatpush.msra.mxu1 %v94_v54 }
  0x2d   :  { %124 = vmatpush.msra.mxu0 %v77_v53  ;;  %209 = vmatpush.msra.mxu2 %v160_v55 }
  0x2e   :  { %232 = vmatpush.msra.mxu3 %v176_v56  ;;  %147 = vmatpush.msra.mxu1 %v93_v58 }
  0x2f   :  { %125 = vmatpush.msra.mxu0 %v76_v57  ;;  %210 = vmatpush.msra.mxu2 %v159_v59 }
  0x30   :  { %233 = vmatpush.msra.mxu3 %v175_v60  ;;  %211 = vmatmul.f32.vlgmr.msra.gmra.mxu2 %v71_v61 }
  0x31   :  { %234 = vmatmul.f32.vlgmr.msra.gmra.mxu3 %v72_v62  ;;  %126 = vmatpush.msra.mxu0 %v75_v63 }
  0x32   :  { %148 = vmatpush.msra.mxu1 %v92_v0  ;;  %127 = vmatmul.f32.vlgmr.msra.gmra.mxu0 %v71_v61 }
  0x34   :  { %149 = vmatpush.msra.mxu1 %v91_v1 }
  0x35   :  { %150 = vmatmul.f32.vlgmr.msra.gmra.mxu1 %v72_v62 }
  0x38   :  { %214 = vmatmul.f32.gmra.mxu2 %v73_v2 }
  0x39   :  { %237 = vmatmul.f32.gmra.mxu3 %v74_v3 }
  0x3a   :  { %130 = vmatmul.f32.gmra.mxu0 %v73_v2 }
  0x3d   :  { %153 = vmatmul.f32.gmra.mxu1 %v74_v3 }
  0xaf   :  { %v128_v5 = vpop.f32.mrf.mxu0 }
  0xb0   :  { %v129_v6 = vadd.f32 %v290_v4, %v128_v5 }
  0xb2   :  { %v151_v8 = vpop.f32.mrf.mxu1 }
  0xb3   :  { %v152_v9 = vadd.f32 %v151_v8, %v129_v6  ;;  %v212_v10 = vpop.f32.mrf.mxu2 }
  0xb4   :  { %v235_v11 = vpop.f32.mrf.mxu3  ;;  %v213_v12 = vadd.f32 %v291_v7, %v212_v10 }
  0xb5   :  { %157 = vst [vmem:[#allocation8] sm:$0xff] %v152_v9 }
  0xb6   :  { %v236_v13 = vadd.f32 %v235_v11, %v213_v12 }
  0xb7   :  { %v131_v14 = vpop.f32.mrf.mxu0 }
  0xb8   :  { %241 = vst [vmem:[#allocation9] sm:$0xff] %v236_v13  ;;  %v132_v15 = vadd.f32 %v290_v4, %v131_v14 }
  0xba   :  { %v154_v16 = vpop.f32.mrf.mxu1 }
  0xbb   :  { %v155_v17 = vadd.f32 %v154_v16, %v132_v15  ;;  %v215_v18 = vpop.f32.mrf.mxu2 }
  0xbc   :  { %v238_v19 = vpop.f32.mrf.mxu3  ;;  %v216_v20 = vadd.f32 %v291_v7, %v215_v18 }
  0xbd   :  { %158 = vst [vmem:[#allocation8 + $0x8] sm:$0xff] %v155_v17 }
  0xbe   :  { %255 = dma.vmem_to_hbm [thread:$0]  %s248_s18, 256, %s250_s2, [#allocation4], %s421_s29, %s421_s29, %s422_s30   ;;  %v239_v21 = vadd.f32 %v238_v19, %v216_v20 }
  0xc0   :  { %242 = vst [vmem:[#allocation9 + $0x8] sm:$0xff] %v239_v21 }
  0xc1   :  { %268 = dma.vmem_to_hbm [thread:$0]  %s261_s21, 256, %s263_s24, [#allocation10], %s421_s29, %s421_s29, %s422_s30  }
  0xc2   :  { %416 = dma.done.wait [#allocation4], 256  }
  0xc3   :  { %417 = vsyncadd [#allocation4], 4294967040 }
  0xc4   :  { %418 = dma.done.wait [#allocation10], 256  }
  0xc5   :  { %419 = vsyncadd [#allocation10], 4294967040 }
  0xc6   :  { %277 = vsyncpa [#allocation3], 1 }
  0xc7   :  { %278 = vsyncpa [#allocation6], 1 }
  0xc8   :  { %279 = vsyncpa [#allocation4], 1 }
  0xc9   :  { %280 = vsyncpa [#allocation10], 1 }

</bundles_post_ra>
